<compile_context>
chip_gen: v7x
topology: tpu7x:2x2x1
jax: 0.10.0
libtpu: 0.0.40
codegen_flags: <defaults>
</compile_context>

<pallas_src>
import functools

import jax
import jax.numpy as jnp
from jax.experimental import pallas as pl
from jax.experimental.pallas import tpu as pltpu


def _gru_kernel(x_ref, h0_ref, wih_ref, whh_ref, bgi_ref, bhn_ref,
                wfc_ref, bfc_ref, y_ref, hn_ref, *, seq_len, batch):
    """Single-invocation fused GRU + Linear.

    x_ref:   (T*B, D)   time-major rows (row = t*B + b)
    h0_ref:  (B, H)
    wih_ref: (3, D, H)  gate-major input weights  (gate order r, z, n)
    whh_ref: (3, H, H)  gate-major hidden weights
    bgi_ref: (3, 1, H)  input-side bias; b_hh already folded in for r, z
    bhn_ref: (1, H)     hidden-side bias of the n gate (stays inside r * (.))
    wfc_ref: (H, O), bfc_ref: (1, O)  output projection
    y_ref:   (T*B, O), hn_ref: (B, H)
    """
    T, B = seq_len, batch
    f32 = jnp.float32

    # ---- Prologue: hoisted input projection over all timesteps (one matmul/gate) ----
    x_all = x_ref[...].astype(f32)                                     # (T*B, D)
    gi = [jnp.dot(x_all, wih_ref[g], preferred_element_type=f32) + bgi_ref[g]
          for g in range(3)]                                           # 3 x (T*B, H)

    # Resident recurrent weights (loaded once).
    w_r = whh_ref[0]
    w_z = whh_ref[1]
    w_n = whh_ref[2]
    b_hn = bhn_ref[...]

    h = h0_ref[...].astype(f32)                                        # (B, H)

    # ---- Recurrence: fully unrolled over T (static, tiny) ----
    hs = []
    for t in range(T):
        lo = t * B
        gh_r = jnp.dot(h, w_r, preferred_element_type=f32)
        gh_z = jnp.dot(h, w_z, preferred_element_type=f32)
        gh_n = jnp.dot(h, w_n, preferred_element_type=f32) + b_hn
        r = jax.nn.sigmoid(gi[0][lo:lo + B, :] + gh_r)
        z = jax.nn.sigmoid(gi[1][lo:lo + B, :] + gh_z)
        n = jnp.tanh(gi[2][lo:lo + B, :] + r * gh_n)
        h = (1.0 - z) * n + z * h
        hs.append(h)

    # Final hidden state written exactly once.
    hn_ref[...] = h.astype(hn_ref.dtype)

    # ---- Epilogue: hoisted output projection, single matmul + single store ----
    hs_all = jnp.concatenate(hs, axis=0)                               # (T*B, H)
    y = jnp.dot(hs_all, wfc_ref[...], preferred_element_type=f32) + bfc_ref[...]
    y_ref[...] = y.astype(y_ref.dtype)


def gru_model_forward(x, h0, params):
    """x: (B, T, D) f32, h0: (1, B, H). params in PyTorch layout.

    Returns (y: (B, T, O), h_n: (1, B, H)) matching GRUModel.forward (eval mode).
    """
    B, T, D = x.shape
    w_hh = params["w_hh"]                       # (3H, H) PyTorch layout
    H = w_hh.shape[1]
    w_fc = params["w_fc"]                       # (O, H)
    O = w_fc.shape[0]

    # --- Kernel-friendly layouts (all one-time XLA reshapes in the wrapper) ---
    x_tm = jnp.transpose(x, (1, 0, 2)).reshape(T * B, D)        # time-major rows
    h0_2d = h0[0]                                               # (B, H)
    wih_g = params["w_ih"].reshape(3, H, D).transpose(0, 2, 1)  # (3, D, H)
    whh_g = w_hh.reshape(3, H, H).transpose(0, 2, 1)            # (3, H, H)
    b_ih3 = params["b_ih"].reshape(3, 1, H)
    b_hh3 = params["b_hh"].reshape(3, 1, H)
    # r/z: fold b_hh into the hoisted projection; n keeps b_hn inside r * (.)
    b_gi = jnp.concatenate([b_ih3[:2] + b_hh3[:2], b_ih3[2:]], axis=0)  # (3, 1, H)
    b_hn = b_hh3[2]                                                      # (1, H)
    wfc_t = w_fc.T                                                       # (H, O)
    bfc_2 = params["b_fc"].reshape(1, O)

    kernel = functools.partial(_gru_kernel, seq_len=T, batch=B)
    vmem = pl.BlockSpec(memory_space=pltpu.MemorySpace.VMEM)

    y_flat, h_n = pl.pallas_call(
        kernel,
        out_shape=(
            jax.ShapeDtypeStruct((T * B, O), x.dtype),
            jax.ShapeDtypeStruct((B, H), x.dtype),
        ),
        in_specs=[vmem] * 8,
        out_specs=(vmem, vmem),
    )(x_tm, h0_2d, wih_g, whh_g, b_gi, b_hn, wfc_t, bfc_2)

    y = y_flat.reshape(T, B, O).transpose(1, 0, 2)              # back to (B, T, O)
    return y, h_n[None, :, :]                                   # (1, B, H) like PyTorch


def init_params(key, input_dim, hidden_dim, output_dim):
    """PyTorch-layout parameters (gate order r, z, n)."""
    ks = jax.random.split(key, 6)
    bound = 1.0 / jnp.sqrt(hidden_dim)
    u = lambda k, shape: jax.random.uniform(k, shape, jnp.float32, -bound, bound)
    return {
        "w_ih": u(ks[0], (3 * hidden_dim, input_dim)),   # weight_ih_l0
        "w_hh": u(ks[1], (3 * hidden_dim, hidden_dim)),  # weight_hh_l0
        "b_ih": u(ks[2], (3 * hidden_dim,)),
        "b_hh": u(ks[3], (3 * hidden_dim,)),
        "w_fc": u(ks[4], (output_dim, hidden_dim)),      # nn.Linear weight
        "b_fc": u(ks[5], (output_dim,)),
    }


def reference_forward(x, h0, params):
    """Pure-JAX reference implementing PyTorch GRU (batch_first) + Linear semantics."""
    H = params["w_hh"].shape[1]
    w_ih, w_hh = params["w_ih"], params["w_hh"]
    b_ih, b_hh = params["b_ih"], params["b_hh"]
    w_fc, b_fc = params["w_fc"], params["b_fc"]

    def step(h, x_t):
        gi = x_t @ w_ih.T + b_ih
        gh = h @ w_hh.T + b_hh
        r = jax.nn.sigmoid(gi[:, :H] + gh[:, :H])
        z = jax.nn.sigmoid(gi[:, H:2 * H] + gh[:, H:2 * H])
        n = jnp.tanh(gi[:, 2 * H:] + r * gh[:, 2 * H:])
        h_new = (1.0 - z) * n + z * h
        y_t = h_new @ w_fc.T + b_fc
        return h_new, y_t

    h_n, ys = jax.lax.scan(step, h0[0].astype(jnp.float32), jnp.transpose(x, (1, 0, 2)))
    return jnp.transpose(ys, (1, 0, 2)), h_n[None]


if __name__ == "__main__":
    B, T, D, H, O = 2, 8, 16, 32, 8

    key = jax.random.PRNGKey(0)
    k_x, k_h, k_p = jax.random.split(key, 3)
    x = jax.random.normal(k_x, (B, T, D), jnp.float32)
    h0 = jax.random.normal(k_h, (1, B, H), jnp.float32)
    params = init_params(k_p, D, H, O)

    y, h_n = jax.jit(gru_model_forward)(x, h0, params)
    jax.block_until_ready((y, h_n))

    y_ref, h_ref = reference_forward(x, h0, params)
    assert y.shape == (B, T, O), y.shape
    assert h_n.shape == (1, B, H), h_n.shape
    assert jnp.allclose(y, y_ref, atol=1e-4, rtol=1e-4), float(jnp.max(jnp.abs(y - y_ref)))
    assert jnp.allclose(h_n, h_ref, atol=1e-4, rtol=1e-4), float(jnp.max(jnp.abs(h_n - h_ref)))

    print("KERNEL_OK")
</pallas_src>

<mosaic_0001>
module attributes {stable_mosaic.version = 11 : i64} {
  func.func @_gru_kernel(%arg0: memref<16x16xf32, #tpu.memory_space<vmem>>, %arg1: memref<2x32xf32, #tpu.memory_space<vmem>>, %arg2: memref<3x16x32xf32, #tpu.memory_space<vmem>>, %arg3: memref<3x32x32xf32, #tpu.memory_space<vmem>>, %arg4: memref<3x1x32xf32, #tpu.memory_space<vmem>>, %arg5: memref<1x32xf32, #tpu.memory_space<vmem>>, %arg6: memref<32x8xf32, #tpu.memory_space<vmem>>, %arg7: memref<1x8xf32, #tpu.memory_space<vmem>>, %arg8: memref<16x8xf32, #tpu.memory_space<vmem>>, %arg9: memref<2x32xf32, #tpu.memory_space<vmem>>) attributes {dimension_semantics = [], scalar_prefetch = 0 : i64, scratch_operands = 0 : i64, tpu.core_type = #tpu.core_type<tc>} {
    %c0 = arith.constant 0 : index
    %c0_0 = arith.constant 0 : index
    %0 = vector.load %arg0[%c0, %c0_0] : memref<16x16xf32, #tpu.memory_space<vmem>>, vector<16x16xf32>
    %c0_1 = arith.constant 0 : index
    %c0_2 = arith.constant 0 : index
    %c0_3 = arith.constant 0 : index
    %1 = vector.load %arg2[%c0_1, %c0_2, %c0_3] : memref<3x16x32xf32, #tpu.memory_space<vmem>>, vector<1x16x32xf32>
    %2 = vector.shape_cast %1 : vector<1x16x32xf32> to vector<16x32xf32>
    %cst = arith.constant dense<0.000000e+00> : vector<16x32xf32>
    %3 = tpu.matmul %0, %2, %cst {dimension_numbers = #tpu.dot_dimension_numbers<[1], [0], [0], [1], [0, 0, 1, 1], [], []>} : vector<16x16xf32>, vector<16x32xf32>, vector<16x32xf32> -> vector<16x32xf32>
    %c0_4 = arith.constant 0 : index
    %c0_5 = arith.constant 0 : index
    %c0_6 = arith.constant 0 : index
    %4 = vector.load %arg4[%c0_4, %c0_5, %c0_6] : memref<3x1x32xf32, #tpu.memory_space<vmem>>, vector<1x1x32xf32>
    %5 = vector.shape_cast %4 : vector<1x1x32xf32> to vector<1x32xf32>
    %6 = vector.broadcast %5 : vector<1x32xf32> to vector<16x32xf32>
    %7 = arith.addf %3, %6 : vector<16x32xf32>
    %c1 = arith.constant 1 : index
    %c0_7 = arith.constant 0 : index
    %c0_8 = arith.constant 0 : index
    %8 = vector.load %arg2[%c1, %c0_7, %c0_8] : memref<3x16x32xf32, #tpu.memory_space<vmem>>, vector<1x16x32xf32>
    %9 = vector.shape_cast %8 : vector<1x16x32xf32> to vector<16x32xf32>
    %cst_9 = arith.constant dense<0.000000e+00> : vector<16x32xf32>
    %10 = tpu.matmul %0, %9, %cst_9 {dimension_numbers = #tpu.dot_dimension_numbers<[1], [0], [0], [1], [0, 0, 1, 1], [], []>} : vector<16x16xf32>, vector<16x32xf32>, vector<16x32xf32> -> vector<16x32xf32>
    %c1_10 = arith.constant 1 : index
    %c0_11 = arith.constant 0 : index
    %c0_12 = arith.constant 0 : index
    %11 = vector.load %arg4[%c1_10, %c0_11, %c0_12] : memref<3x1x32xf32, #tpu.memory_space<vmem>>, vector<1x1x32xf32>
    %12 = vector.shape_cast %11 : vector<1x1x32xf32> to vector<1x32xf32>
    %13 = vector.broadcast %12 : vector<1x32xf32> to vector<16x32xf32>
    %14 = arith.addf %10, %13 : vector<16x32xf32>
    %c2 = arith.constant 2 : index
    %c0_13 = arith.constant 0 : index
    %c0_14 = arith.constant 0 : index
    %15 = vector.load %arg2[%c2, %c0_13, %c0_14] : memref<3x16x32xf32, #tpu.memory_space<vmem>>, vector<1x16x32xf32>
    %16 = vector.shape_cast %15 : vector<1x16x32xf32> to vector<16x32xf32>
    %cst_15 = arith.constant dense<0.000000e+00> : vector<16x32xf32>
    %17 = tpu.matmul %0, %16, %cst_15 {dimension_numbers = #tpu.dot_dimension_numbers<[1], [0], [0], [1], [0, 0, 1, 1], [], []>} : vector<16x16xf32>, vector<16x32xf32>, vector<16x32xf32> -> vector<16x32xf32>
    %c2_16 = arith.constant 2 : index
    %c0_17 = arith.constant 0 : index
    %c0_18 = arith.constant 0 : index
    %18 = vector.load %arg4[%c2_16, %c0_17, %c0_18] : memref<3x1x32xf32, #tpu.memory_space<vmem>>, vector<1x1x32xf32>
    %19 = vector.shape_cast %18 : vector<1x1x32xf32> to vector<1x32xf32>
    %20 = vector.broadcast %19 : vector<1x32xf32> to vector<16x32xf32>
    %21 = arith.addf %17, %20 : vector<16x32xf32>
    %c0_19 = arith.constant 0 : index
    %c0_20 = arith.constant 0 : index
    %c0_21 = arith.constant 0 : index
    %22 = vector.load %arg3[%c0_19, %c0_20, %c0_21] : memref<3x32x32xf32, #tpu.memory_space<vmem>>, vector<1x32x32xf32>
    %23 = vector.shape_cast %22 : vector<1x32x32xf32> to vector<32x32xf32>
    %c1_22 = arith.constant 1 : index
    %c0_23 = arith.constant 0 : index
    %c0_24 = arith.constant 0 : index
    %24 = vector.load %arg3[%c1_22, %c0_23, %c0_24] : memref<3x32x32xf32, #tpu.memory_space<vmem>>, vector<1x32x32xf32>
    %25 = vector.shape_cast %24 : vector<1x32x32xf32> to vector<32x32xf32>
    %c2_25 = arith.constant 2 : index
    %c0_26 = arith.constant 0 : index
    %c0_27 = arith.constant 0 : index
    %26 = vector.load %arg3[%c2_25, %c0_26, %c0_27] : memref<3x32x32xf32, #tpu.memory_space<vmem>>, vector<1x32x32xf32>
    %27 = vector.shape_cast %26 : vector<1x32x32xf32> to vector<32x32xf32>
    %c0_28 = arith.constant 0 : index
    %c0_29 = arith.constant 0 : index
    %28 = vector.load %arg5[%c0_28, %c0_29] : memref<1x32xf32, #tpu.memory_space<vmem>>, vector<1x32xf32>
    %c0_30 = arith.constant 0 : index
    %c0_31 = arith.constant 0 : index
    %29 = vector.load %arg1[%c0_30, %c0_31] : memref<2x32xf32, #tpu.memory_space<vmem>>, vector<2x32xf32>
    %cst_32 = arith.constant dense<0.000000e+00> : vector<2x32xf32>
    %30 = tpu.matmul %29, %23, %cst_32 {dimension_numbers = #tpu.dot_dimension_numbers<[1], [0], [0], [1], [0, 0, 1, 1], [], []>} : vector<2x32xf32>, vector<32x32xf32>, vector<2x32xf32> -> vector<2x32xf32>
    %cst_33 = arith.constant dense<0.000000e+00> : vector<2x32xf32>
    %31 = tpu.matmul %29, %25, %cst_33 {dimension_numbers = #tpu.dot_dimension_numbers<[1], [0], [0], [1], [0, 0, 1, 1], [], []>} : vector<2x32xf32>, vector<32x32xf32>, vector<2x32xf32> -> vector<2x32xf32>
    %cst_34 = arith.constant dense<0.000000e+00> : vector<2x32xf32>
    %32 = tpu.matmul %29, %27, %cst_34 {dimension_numbers = #tpu.dot_dimension_numbers<[1], [0], [0], [1], [0, 0, 1, 1], [], []>} : vector<2x32xf32>, vector<32x32xf32>, vector<2x32xf32> -> vector<2x32xf32>
    %33 = vector.broadcast %28 : vector<1x32xf32> to vector<2x32xf32>
    %34 = arith.addf %32, %33 : vector<2x32xf32>
    %35 = vector.extract_strided_slice %7 {offsets = [0, 0], sizes = [2, 32], strides = [1, 1]} : vector<16x32xf32> to vector<2x32xf32>
    %36 = arith.addf %35, %30 : vector<2x32xf32>
    %37 = arith.negf %36 : vector<2x32xf32>
    %38 = math.exp %37 : vector<2x32xf32>
    %cst_35 = arith.constant 1.000000e+00 : f32
    %39 = vector.broadcast %cst_35 : f32 to vector<2x32xf32>
    %40 = arith.addf %39, %38 : vector<2x32xf32>
    %41 = arith.divf %39, %40 : vector<2x32xf32>
    %42 = vector.extract_strided_slice %14 {offsets = [0, 0], sizes = [2, 32], strides = [1, 1]} : vector<16x32xf32> to vector<2x32xf32>
    %43 = arith.addf %42, %31 : vector<2x32xf32>
    %44 = arith.negf %43 : vector<2x32xf32>
    %45 = math.exp %44 : vector<2x32xf32>
    %cst_36 = arith.constant 1.000000e+00 : f32
    %46 = vector.broadcast %cst_36 : f32 to vector<2x32xf32>
    %47 = arith.addf %46, %45 : vector<2x32xf32>
    %48 = arith.divf %46, %47 : vector<2x32xf32>
    %49 = vector.extract_strided_slice %21 {offsets = [0, 0], sizes = [2, 32], strides = [1, 1]} : vector<16x32xf32> to vector<2x32xf32>
    %50 = arith.mulf %41, %34 : vector<2x32xf32>
    %51 = arith.addf %49, %50 : vector<2x32xf32>
    %52 = math.tanh %51 : vector<2x32xf32>
    %cst_37 = arith.constant 1.000000e+00 : f32
    %53 = vector.broadcast %cst_37 : f32 to vector<2x32xf32>
    %54 = arith.subf %53, %48 : vector<2x32xf32>
    %55 = arith.mulf %54, %52 : vector<2x32xf32>
    %56 = arith.mulf %48, %29 : vector<2x32xf32>
    %57 = arith.addf %55, %56 : vector<2x32xf32>
    %cst_38 = arith.constant dense<0.000000e+00> : vector<2x32xf32>
    %58 = tpu.matmul %57, %23, %cst_38 {dimension_numbers = #tpu.dot_dimension_numbers<[1], [0], [0], [1], [0, 0, 1, 1], [], []>} : vector<2x32xf32>, vector<32x32xf32>, vector<2x32xf32> -> vector<2x32xf32>
    %cst_39 = arith.constant dense<0.000000e+00> : vector<2x32xf32>
    %59 = tpu.matmul %57, %25, %cst_39 {dimension_numbers = #tpu.dot_dimension_numbers<[1], [0], [0], [1], [0, 0, 1, 1], [], []>} : vector<2x32xf32>, vector<32x32xf32>, vector<2x32xf32> -> vector<2x32xf32>
    %cst_40 = arith.constant dense<0.000000e+00> : vector<2x32xf32>
    %60 = tpu.matmul %57, %27, %cst_40 {dimension_numbers = #tpu.dot_dimension_numbers<[1], [0], [0], [1], [0, 0, 1, 1], [], []>} : vector<2x32xf32>, vector<32x32xf32>, vector<2x32xf32> -> vector<2x32xf32>
    %61 = vector.broadcast %28 : vector<1x32xf32> to vector<2x32xf32>
    %62 = arith.addf %60, %61 : vector<2x32xf32>
    %63 = vector.extract_strided_slice %7 {offsets = [2, 0], sizes = [2, 32], strides = [1, 1]} : vector<16x32xf32> to vector<2x32xf32>
    %64 = arith.addf %63, %58 : vector<2x32xf32>
    %65 = arith.negf %64 : vector<2x32xf32>
    %66 = math.exp %65 : vector<2x32xf32>
    %cst_41 = arith.constant 1.000000e+00 : f32
    %67 = vector.broadcast %cst_41 : f32 to vector<2x32xf32>
    %68 = arith.addf %67, %66 : vector<2x32xf32>
    %69 = arith.divf %67, %68 : vector<2x32xf32>
    %70 = vector.extract_strided_slice %14 {offsets = [2, 0], sizes = [2, 32], strides = [1, 1]} : vector<16x32xf32> to vector<2x32xf32>
    %71 = arith.addf %70, %59 : vector<2x32xf32>
    %72 = arith.negf %71 : vector<2x32xf32>
    %73 = math.exp %72 : vector<2x32xf32>
    %cst_42 = arith.constant 1.000000e+00 : f32
    %74 = vector.broadcast %cst_42 : f32 to vector<2x32xf32>
    %75 = arith.addf %74, %73 : vector<2x32xf32>
    %76 = arith.divf %74, %75 : vector<2x32xf32>
    %77 = vector.extract_strided_slice %21 {offsets = [2, 0], sizes = [2, 32], strides = [1, 1]} : vector<16x32xf32> to vector<2x32xf32>
    %78 = arith.mulf %69, %62 : vector<2x32xf32>
    %79 = arith.addf %77, %78 : vector<2x32xf32>
    %80 = math.tanh %79 : vector<2x32xf32>
    %cst_43 = arith.constant 1.000000e+00 : f32
    %81 = vector.broadcast %cst_43 : f32 to vector<2x32xf32>
    %82 = arith.subf %81, %76 : vector<2x32xf32>
    %83 = arith.mulf %82, %80 : vector<2x32xf32>
    %84 = arith.mulf %76, %57 : vector<2x32xf32>
    %85 = arith.addf %83, %84 : vector<2x32xf32>
    %cst_44 = arith.constant dense<0.000000e+00> : vector<2x32xf32>
    %86 = tpu.matmul %85, %23, %cst_44 {dimension_numbers = #tpu.dot_dimension_numbers<[1], [0], [0], [1], [0, 0, 1, 1], [], []>} : vector<2x32xf32>, vector<32x32xf32>, vector<2x32xf32> -> vector<2x32xf32>
    %cst_45 = arith.constant dense<0.000000e+00> : vector<2x32xf32>
    %87 = tpu.matmul %85, %25, %cst_45 {dimension_numbers = #tpu.dot_dimension_numbers<[1], [0], [0], [1], [0, 0, 1, 1], [], []>} : vector<2x32xf32>, vector<32x32xf32>, vector<2x32xf32> -> vector<2x32xf32>
    %cst_46 = arith.constant dense<0.000000e+00> : vector<2x32xf32>
    %88 = tpu.matmul %85, %27, %cst_46 {dimension_numbers = #tpu.dot_dimension_numbers<[1], [0], [0], [1], [0, 0, 1, 1], [], []>} : vector<2x32xf32>, vector<32x32xf32>, vector<2x32xf32> -> vector<2x32xf32>
    %89 = vector.broadcast %28 : vector<1x32xf32> to vector<2x32xf32>
    %90 = arith.addf %88, %89 : vector<2x32xf32>
    %91 = vector.extract_strided_slice %7 {offsets = [4, 0], sizes = [2, 32], strides = [1, 1]} : vector<16x32xf32> to vector<2x32xf32>
    %92 = arith.addf %91, %86 : vector<2x32xf32>
    %93 = arith.negf %92 : vector<2x32xf32>
    %94 = math.exp %93 : vector<2x32xf32>
    %cst_47 = arith.constant 1.000000e+00 : f32
    %95 = vector.broadcast %cst_47 : f32 to vector<2x32xf32>
    %96 = arith.addf %95, %94 : vector<2x32xf32>
    %97 = arith.divf %95, %96 : vector<2x32xf32>
    %98 = vector.extract_strided_slice %14 {offsets = [4, 0], sizes = [2, 32], strides = [1, 1]} : vector<16x32xf32> to vector<2x32xf32>
    %99 = arith.addf %98, %87 : vector<2x32xf32>
    %100 = arith.negf %99 : vector<2x32xf32>
    %101 = math.exp %100 : vector<2x32xf32>
    %cst_48 = arith.constant 1.000000e+00 : f32
    %102 = vector.broadcast %cst_48 : f32 to vector<2x32xf32>
    %103 = arith.addf %102, %101 : vector<2x32xf32>
    %104 = arith.divf %102, %103 : vector<2x32xf32>
    %105 = vector.extract_strided_slice %21 {offsets = [4, 0], sizes = [2, 32], strides = [1, 1]} : vector<16x32xf32> to vector<2x32xf32>
    %106 = arith.mulf %97, %90 : vector<2x32xf32>
    %107 = arith.addf %105, %106 : vector<2x32xf32>
    %108 = math.tanh %107 : vector<2x32xf32>
    %cst_49 = arith.constant 1.000000e+00 : f32
    %109 = vector.broadcast %cst_49 : f32 to vector<2x32xf32>
    %110 = arith.subf %109, %104 : vector<2x32xf32>
    %111 = arith.mulf %110, %108 : vector<2x32xf32>
    %112 = arith.mulf %104, %85 : vector<2x32xf32>
    %113 = arith.addf %111, %112 : vector<2x32xf32>
    %cst_50 = arith.constant dense<0.000000e+00> : vector<2x32xf32>
    %114 = tpu.matmul %113, %23, %cst_50 {dimension_numbers = #tpu.dot_dimension_numbers<[1], [0], [0], [1], [0, 0, 1, 1], [], []>} : vector<2x32xf32>, vector<32x32xf32>, vector<2x32xf32> -> vector<2x32xf32>
    %cst_51 = arith.constant dense<0.000000e+00> : vector<2x32xf32>
    %115 = tpu.matmul %113, %25, %cst_51 {dimension_numbers = #tpu.dot_dimension_numbers<[1], [0], [0], [1], [0, 0, 1, 1], [], []>} : vector<2x32xf32>, vector<32x32xf32>, vector<2x32xf32> -> vector<2x32xf32>
    %cst_52 = arith.constant dense<0.000000e+00> : vector<2x32xf32>
    %116 = tpu.matmul %113, %27, %cst_52 {dimension_numbers = #tpu.dot_dimension_numbers<[1], [0], [0], [1], [0, 0, 1, 1], [], []>} : vector<2x32xf32>, vector<32x32xf32>, vector<2x32xf32> -> vector<2x32xf32>
    %117 = vector.broadcast %28 : vector<1x32xf32> to vector<2x32xf32>
    %118 = arith.addf %116, %117 : vector<2x32xf32>
    %119 = vector.extract_strided_slice %7 {offsets = [6, 0], sizes = [2, 32], strides = [1, 1]} : vector<16x32xf32> to vector<2x32xf32>
    %120 = arith.addf %119, %114 : vector<2x32xf32>
    %121 = arith.negf %120 : vector<2x32xf32>
    %122 = math.exp %121 : vector<2x32xf32>
    %cst_53 = arith.constant 1.000000e+00 : f32
    %123 = vector.broadcast %cst_53 : f32 to vector<2x32xf32>
    %124 = arith.addf %123, %122 : vector<2x32xf32>
    %125 = arith.divf %123, %124 : vector<2x32xf32>
    %126 = vector.extract_strided_slice %14 {offsets = [6, 0], sizes = [2, 32], strides = [1, 1]} : vector<16x32xf32> to vector<2x32xf32>
    %127 = arith.addf %126, %115 : vector<2x32xf32>
    %128 = arith.negf %127 : vector<2x32xf32>
    %129 = math.exp %128 : vector<2x32xf32>
    %cst_54 = arith.constant 1.000000e+00 : f32
    %130 = vector.broadcast %cst_54 : f32 to vector<2x32xf32>
    %131 = arith.addf %130, %129 : vector<2x32xf32>
    %132 = arith.divf %130, %131 : vector<2x32xf32>
    %133 = vector.extract_strided_slice %21 {offsets = [6, 0], sizes = [2, 32], strides = [1, 1]} : vector<16x32xf32> to vector<2x32xf32>
    %134 = arith.mulf %125, %118 : vector<2x32xf32>
    %135 = arith.addf %133, %134 : vector<2x32xf32>
    %136 = math.tanh %135 : vector<2x32xf32>
    %cst_55 = arith.constant 1.000000e+00 : f32
    %137 = vector.broadcast %cst_55 : f32 to vector<2x32xf32>
    %138 = arith.subf %137, %132 : vector<2x32xf32>
    %139 = arith.mulf %138, %136 : vector<2x32xf32>
    %140 = arith.mulf %132, %113 : vector<2x32xf32>
    %141 = arith.addf %139, %140 : vector<2x32xf32>
    %cst_56 = arith.constant dense<0.000000e+00> : vector<2x32xf32>
    %142 = tpu.matmul %141, %23, %cst_56 {dimension_numbers = #tpu.dot_dimension_numbers<[1], [0], [0], [1], [0, 0, 1, 1], [], []>} : vector<2x32xf32>, vector<32x32xf32>, vector<2x32xf32> -> vector<2x32xf32>
    %cst_57 = arith.constant dense<0.000000e+00> : vector<2x32xf32>
    %143 = tpu.matmul %141, %25, %cst_57 {dimension_numbers = #tpu.dot_dimension_numbers<[1], [0], [0], [1], [0, 0, 1, 1], [], []>} : vector<2x32xf32>, vector<32x32xf32>, vector<2x32xf32> -> vector<2x32xf32>
    %cst_58 = arith.constant dense<0.000000e+00> : vector<2x32xf32>
    %144 = tpu.matmul %141, %27, %cst_58 {dimension_numbers = #tpu.dot_dimension_numbers<[1], [0], [0], [1], [0, 0, 1, 1], [], []>} : vector<2x32xf32>, vector<32x32xf32>, vector<2x32xf32> -> vector<2x32xf32>
    %145 = vector.broadcast %28 : vector<1x32xf32> to vector<2x32xf32>
    %146 = arith.addf %144, %145 : vector<2x32xf32>
    %147 = vector.extract_strided_slice %7 {offsets = [8, 0], sizes = [2, 32], strides = [1, 1]} : vector<16x32xf32> to vector<2x32xf32>
    %148 = arith.addf %147, %142 : vector<2x32xf32>
    %149 = arith.negf %148 : vector<2x32xf32>
    %150 = math.exp %149 : vector<2x32xf32>
    %cst_59 = arith.constant 1.000000e+00 : f32
    %151 = vector.broadcast %cst_59 : f32 to vector<2x32xf32>
    %152 = arith.addf %151, %150 : vector<2x32xf32>
    %153 = arith.divf %151, %152 : vector<2x32xf32>
    %154 = vector.extract_strided_slice %14 {offsets = [8, 0], sizes = [2, 32], strides = [1, 1]} : vector<16x32xf32> to vector<2x32xf32>
    %155 = arith.addf %154, %143 : vector<2x32xf32>
    %156 = arith.negf %155 : vector<2x32xf32>
    %157 = math.exp %156 : vector<2x32xf32>
    %cst_60 = arith.constant 1.000000e+00 : f32
    %158 = vector.broadcast %cst_60 : f32 to vector<2x32xf32>
    %159 = arith.addf %158, %157 : vector<2x32xf32>
    %160 = arith.divf %158, %159 : vector<2x32xf32>
    %161 = vector.extract_strided_slice %21 {offsets = [8, 0], sizes = [2, 32], strides = [1, 1]} : vector<16x32xf32> to vector<2x32xf32>
    %162 = arith.mulf %153, %146 : vector<2x32xf32>
    %163 = arith.addf %161, %162 : vector<2x32xf32>
    %164 = math.tanh %163 : vector<2x32xf32>
    %cst_61 = arith.constant 1.000000e+00 : f32
    %165 = vector.broadcast %cst_61 : f32 to vector<2x32xf32>
    %166 = arith.subf %165, %160 : vector<2x32xf32>
    %167 = arith.mulf %166, %164 : vector<2x32xf32>
    %168 = arith.mulf %160, %141 : vector<2x32xf32>
    %169 = arith.addf %167, %168 : vector<2x32xf32>
    %cst_62 = arith.constant dense<0.000000e+00> : vector<2x32xf32>
    %170 = tpu.matmul %169, %23, %cst_62 {dimension_numbers = #tpu.dot_dimension_numbers<[1], [0], [0], [1], [0, 0, 1, 1], [], []>} : vector<2x32xf32>, vector<32x32xf32>, vector<2x32xf32> -> vector<2x32xf32>
    %cst_63 = arith.constant dense<0.000000e+00> : vector<2x32xf32>
    %171 = tpu.matmul %169, %25, %cst_63 {dimension_numbers = #tpu.dot_dimension_numbers<[1], [0], [0], [1], [0, 0, 1, 1], [], []>} : vector<2x32xf32>, vector<32x32xf32>, vector<2x32xf32> -> vector<2x32xf32>
    %cst_64 = arith.constant dense<0.000000e+00> : vector<2x32xf32>
    %172 = tpu.matmul %169, %27, %cst_64 {dimension_numbers = #tpu.dot_dimension_numbers<[1], [0], [0], [1], [0, 0, 1, 1], [], []>} : vector<2x32xf32>, vector<32x32xf32>, vector<2x32xf32> -> vector<2x32xf32>
    %173 = vector.broadcast %28 : vector<1x32xf32> to vector<2x32xf32>
    %174 = arith.addf %172, %173 : vector<2x32xf32>
    %175 = vector.extract_strided_slice %7 {offsets = [10, 0], sizes = [2, 32], strides = [1, 1]} : vector<16x32xf32> to vector<2x32xf32>
    %176 = arith.addf %175, %170 : vector<2x32xf32>
    %177 = arith.negf %176 : vector<2x32xf32>
    %178 = math.exp %177 : vector<2x32xf32>
    %cst_65 = arith.constant 1.000000e+00 : f32
    %179 = vector.broadcast %cst_65 : f32 to vector<2x32xf32>
    %180 = arith.addf %179, %178 : vector<2x32xf32>
    %181 = arith.divf %179, %180 : vector<2x32xf32>
    %182 = vector.extract_strided_slice %14 {offsets = [10, 0], sizes = [2, 32], strides = [1, 1]} : vector<16x32xf32> to vector<2x32xf32>
    %183 = arith.addf %182, %171 : vector<2x32xf32>
    %184 = arith.negf %183 : vector<2x32xf32>
    %185 = math.exp %184 : vector<2x32xf32>
    %cst_66 = arith.constant 1.000000e+00 : f32
    %186 = vector.broadcast %cst_66 : f32 to vector<2x32xf32>
    %187 = arith.addf %186, %185 : vector<2x32xf32>
    %188 = arith.divf %186, %187 : vector<2x32xf32>
    %189 = vector.extract_strided_slice %21 {offsets = [10, 0], sizes = [2, 32], strides = [1, 1]} : vector<16x32xf32> to vector<2x32xf32>
    %190 = arith.mulf %181, %174 : vector<2x32xf32>
    %191 = arith.addf %189, %190 : vector<2x32xf32>
    %192 = math.tanh %191 : vector<2x32xf32>
    %cst_67 = arith.constant 1.000000e+00 : f32
    %193 = vector.broadcast %cst_67 : f32 to vector<2x32xf32>
    %194 = arith.subf %193, %188 : vector<2x32xf32>
    %195 = arith.mulf %194, %192 : vector<2x32xf32>
    %196 = arith.mulf %188, %169 : vector<2x32xf32>
    %197 = arith.addf %195, %196 : vector<2x32xf32>
    %cst_68 = arith.constant dense<0.000000e+00> : vector<2x32xf32>
    %198 = tpu.matmul %197, %23, %cst_68 {dimension_numbers = #tpu.dot_dimension_numbers<[1], [0], [0], [1], [0, 0, 1, 1], [], []>} : vector<2x32xf32>, vector<32x32xf32>, vector<2x32xf32> -> vector<2x32xf32>
    %cst_69 = arith.constant dense<0.000000e+00> : vector<2x32xf32>
    %199 = tpu.matmul %197, %25, %cst_69 {dimension_numbers = #tpu.dot_dimension_numbers<[1], [0], [0], [1], [0, 0, 1, 1], [], []>} : vector<2x32xf32>, vector<32x32xf32>, vector<2x32xf32> -> vector<2x32xf32>
    %cst_70 = arith.constant dense<0.000000e+00> : vector<2x32xf32>
    %200 = tpu.matmul %197, %27, %cst_70 {dimension_numbers = #tpu.dot_dimension_numbers<[1], [0], [0], [1], [0, 0, 1, 1], [], []>} : vector<2x32xf32>, vector<32x32xf32>, vector<2x32xf32> -> vector<2x32xf32>
    %201 = vector.broadcast %28 : vector<1x32xf32> to vector<2x32xf32>
    %202 = arith.addf %200, %201 : vector<2x32xf32>
    %203 = vector.extract_strided_slice %7 {offsets = [12, 0], sizes = [2, 32], strides = [1, 1]} : vector<16x32xf32> to vector<2x32xf32>
    %204 = arith.addf %203, %198 : vector<2x32xf32>
    %205 = arith.negf %204 : vector<2x32xf32>
    %206 = math.exp %205 : vector<2x32xf32>
    %cst_71 = arith.constant 1.000000e+00 : f32
    %207 = vector.broadcast %cst_71 : f32 to vector<2x32xf32>
    %208 = arith.addf %207, %206 : vector<2x32xf32>
    %209 = arith.divf %207, %208 : vector<2x32xf32>
    %210 = vector.extract_strided_slice %14 {offsets = [12, 0], sizes = [2, 32], strides = [1, 1]} : vector<16x32xf32> to vector<2x32xf32>
    %211 = arith.addf %210, %199 : vector<2x32xf32>
    %212 = arith.negf %211 : vector<2x32xf32>
    %213 = math.exp %212 : vector<2x32xf32>
    %cst_72 = arith.constant 1.000000e+00 : f32
    %214 = vector.broadcast %cst_72 : f32 to vector<2x32xf32>
    %215 = arith.addf %214, %213 : vector<2x32xf32>
    %216 = arith.divf %214, %215 : vector<2x32xf32>
    %217 = vector.extract_strided_slice %21 {offsets = [12, 0], sizes = [2, 32], strides = [1, 1]} : vector<16x32xf32> to vector<2x32xf32>
    %218 = arith.mulf %209, %202 : vector<2x32xf32>
    %219 = arith.addf %217, %218 : vector<2x32xf32>
    %220 = math.tanh %219 : vector<2x32xf32>
    %cst_73 = arith.constant 1.000000e+00 : f32
    %221 = vector.broadcast %cst_73 : f32 to vector<2x32xf32>
    %222 = arith.subf %221, %216 : vector<2x32xf32>
    %223 = arith.mulf %222, %220 : vector<2x32xf32>
    %224 = arith.mulf %216, %197 : vector<2x32xf32>
    %225 = arith.addf %223, %224 : vector<2x32xf32>
    %cst_74 = arith.constant dense<0.000000e+00> : vector<2x32xf32>
    %226 = tpu.matmul %225, %23, %cst_74 {dimension_numbers = #tpu.dot_dimension_numbers<[1], [0], [0], [1], [0, 0, 1, 1], [], []>} : vector<2x32xf32>, vector<32x32xf32>, vector<2x32xf32> -> vector<2x32xf32>
    %cst_75 = arith.constant dense<0.000000e+00> : vector<2x32xf32>
    %227 = tpu.matmul %225, %25, %cst_75 {dimension_numbers = #tpu.dot_dimension_numbers<[1], [0], [0], [1], [0, 0, 1, 1], [], []>} : vector<2x32xf32>, vector<32x32xf32>, vector<2x32xf32> -> vector<2x32xf32>
    %cst_76 = arith.constant dense<0.000000e+00> : vector<2x32xf32>
    %228 = tpu.matmul %225, %27, %cst_76 {dimension_numbers = #tpu.dot_dimension_numbers<[1], [0], [0], [1], [0, 0, 1, 1], [], []>} : vector<2x32xf32>, vector<32x32xf32>, vector<2x32xf32> -> vector<2x32xf32>
    %229 = vector.broadcast %28 : vector<1x32xf32> to vector<2x32xf32>
    %230 = arith.addf %228, %229 : vector<2x32xf32>
    %231 = vector.extract_strided_slice %7 {offsets = [14, 0], sizes = [2, 32], strides = [1, 1]} : vector<16x32xf32> to vector<2x32xf32>
    %232 = arith.addf %231, %226 : vector<2x32xf32>
    %233 = arith.negf %232 : vector<2x32xf32>
    %234 = math.exp %233 : vector<2x32xf32>
    %cst_77 = arith.constant 1.000000e+00 : f32
    %235 = vector.broadcast %cst_77 : f32 to vector<2x32xf32>
    %236 = arith.addf %235, %234 : vector<2x32xf32>
    %237 = arith.divf %235, %236 : vector<2x32xf32>
    %238 = vector.extract_strided_slice %14 {offsets = [14, 0], sizes = [2, 32], strides = [1, 1]} : vector<16x32xf32> to vector<2x32xf32>
    %239 = arith.addf %238, %227 : vector<2x32xf32>
    %240 = arith.negf %239 : vector<2x32xf32>
    %241 = math.exp %240 : vector<2x32xf32>
    %cst_78 = arith.constant 1.000000e+00 : f32
    %242 = vector.broadcast %cst_78 : f32 to vector<2x32xf32>
    %243 = arith.addf %242, %241 : vector<2x32xf32>
    %244 = arith.divf %242, %243 : vector<2x32xf32>
    %245 = vector.extract_strided_slice %21 {offsets = [14, 0], sizes = [2, 32], strides = [1, 1]} : vector<16x32xf32> to vector<2x32xf32>
    %246 = arith.mulf %237, %230 : vector<2x32xf32>
    %247 = arith.addf %245, %246 : vector<2x32xf32>
    %248 = math.tanh %247 : vector<2x32xf32>
    %cst_79 = arith.constant 1.000000e+00 : f32
    %249 = vector.broadcast %cst_79 : f32 to vector<2x32xf32>
    %250 = arith.subf %249, %244 : vector<2x32xf32>
    %251 = arith.mulf %250, %248 : vector<2x32xf32>
    %252 = arith.mulf %244, %225 : vector<2x32xf32>
    %253 = arith.addf %251, %252 : vector<2x32xf32>
    %c0_80 = arith.constant 0 : index
    %c0_81 = arith.constant 0 : index
    %254 = vector.load %arg9[%c0_80, %c0_81] : memref<2x32xf32, #tpu.memory_space<vmem>>, vector<2x32xf32>
    tpu.vector_store %arg9[%c0_80, %c0_81], %253 {strides = array<i32>} : memref<2x32xf32, #tpu.memory_space<vmem>>, vector<2x32xf32>,
    %255 = tpu.concatenate %57, %85, %113, %141, %169, %197, %225, %253 in 0 : vector<2x32xf32>, vector<2x32xf32>, vector<2x32xf32>, vector<2x32xf32>, vector<2x32xf32>, vector<2x32xf32>, vector<2x32xf32>, vector<2x32xf32> -> vector<16x32xf32>
    %c0_82 = arith.constant 0 : index
    %c0_83 = arith.constant 0 : index
    %256 = vector.load %arg6[%c0_82, %c0_83] : memref<32x8xf32, #tpu.memory_space<vmem>>, vector<32x8xf32>
    %cst_84 = arith.constant dense<0.000000e+00> : vector<16x8xf32>
    %257 = tpu.matmul %255, %256, %cst_84 {dimension_numbers = #tpu.dot_dimension_numbers<[1], [0], [0], [1], [0, 0, 1, 1], [], []>} : vector<16x32xf32>, vector<32x8xf32>, vector<16x8xf32> -> vector<16x8xf32>
    %c0_85 = arith.constant 0 : index
    %c0_86 = arith.constant 0 : index
    %258 = vector.load %arg7[%c0_85, %c0_86] : memref<1x8xf32, #tpu.memory_space<vmem>>, vector<1x8xf32>
    %259 = vector.broadcast %258 : vector<1x8xf32> to vector<16x8xf32>
    %260 = arith.addf %257, %259 : vector<16x8xf32>
    %c0_87 = arith.constant 0 : index
    %c0_88 = arith.constant 0 : index
    %261 = vector.load %arg8[%c0_87, %c0_88] : memref<16x8xf32, #tpu.memory_space<vmem>>, vector<16x8xf32>
    tpu.vector_store %arg8[%c0_87, %c0_88], %260 {strides = array<i32>} : memref<16x8xf32, #tpu.memory_space<vmem>>, vector<16x8xf32>,
    return
  }
}

</mosaic_0001>

<bundles_post_ra>
// kernel: gru_model_forward.1
= control target key start
LH: loop header
LB: loop body
LE: loop exit
PB: predicated region body
PF: predicated region fallthrough
CT: control target
= control target key end

     0   :  { %vm43_vm0 = vcmask 130048   ;;  %v3161_v16 = vmov 0.0|0.0   ;;  %s3586_s0 = inlined_call_operand.vmem [shape: f32[16,16], index: 0, kind: input, shape index: {}]   ;;  %s3587_s1 = inlined_call_operand.vmem [shape: f32[2,32], index: 1, kind: input, shape index: {}]   ;;  %s3588_s2 = inlined_call_operand.vmem [shape: f32[3,16,32], index: 2, kind: input, shape index: {}]   ;;  %s3589_s3 = inlined_call_operand.vmem [shape: f32[3,32,32], index: 3, kind: input, shape index: {}]   ;;  %s3590_s4 = inlined_call_operand.vmem [shape: f32[3,1,32], index: 4, kind: input, shape index: {}]   ;;  %s3591_s5 = inlined_call_operand.vmem [shape: f32[1,32], index: 5, kind: input, shape index: {}]   ;;  %s3592_s6 = inlined_call_operand.vmem [shape: f32[32,8], index: 6, kind: input, shape index: {}]   ;;  %s3593_s7 = inlined_call_operand.vmem [shape: f32[1,8], index: 7, kind: input, shape index: {}]   ;;  %s3594_s8 = inlined_call_operand.vmem [shape: f32[16,8], index: 8, kind: output, shape index: {0}]   ;;  %s3595_s9 = inlined_call_operand.hbm [shape: f32[2,32], index: 9, kind: output, shape index: {1}]  }
   0x1   :  { %v34_v0 = vld [vmem:[%s3588_s2] sm:$0xff]  ;;  %v35_v1 = vld [vmem:[%s3588_s2 + $0x8] sm:$0xff]  ;;  %v2391_v2 = vld [vmem:[%s3588_s2 + $0x10] sm:$0xff] }
   0x2   :  { %v2889_v3 = vpack.c.bf16 %v35_v1, %v34_v0  ;;  %v2392_v4 = vld [vmem:[%s3588_s2 + $0x18] sm:$0xff]  ;;  %v32_v5 = vld [vmem:[%s3586_s0] sm:$0xff]  ;;  %v2398_v8 = vld [vmem:[%s3588_s2 + $0x28] sm:$0xff] }
   0x3   :  { %v2893_v6 = vpack.c.bf16 %v2392_v4, %v2391_v2  ;;  %2604 = vmatprep.mubr.msk.f32.mxu1 %vm43_vm0, %v32_v5  ;;  %2597 = vmatprep.mubr.msk.f32.mxu0 %vm43_vm0, %v32_v5  ;;  %v2397_v7 = vld [vmem:[%s3588_s2 + $0x20] sm:$0xff]  ;;  %v298_v11 = vld [vmem:[%s3589_s3 + $0x8] sm:$0xff]  ;;  %v299_v17 = vld [vmem:[%s3589_s3 + $0x10] sm:$0xff] }
   0x4   :  { %v297_v9 = vld [vmem:[%s3589_s3] sm:$0xff]  ;;  %2890 = vmatprep.subr.bf16.mxu0 %v2889_v3  ;;  %v2897_v10 = vpack.c.bf16 %v2398_v8, %v2397_v7  ;;  %v33_v12 = vld [vmem:[%s3586_s0 + $0x8] sm:$0xff]  ;;  %v300_v18 = vld [vmem:[%s3589_s3 + $0x18] sm:$0xff] }
   0x5   :  { %2894 = vmatprep.subr.bf16.mxu1 %v2893_v6  ;;  %2892 = vmatpush3.bf16.msra.mxu0 %v2889_v3  ;;  %v3247_v13 = vpack.c.bf16 %v298_v11, %v297_v9  ;;  %v2403_v14 = vld [vmem:[%s3589_s3 + $0x20] sm:$0xff]  ;;  %v2404_v15 = vld [vmem:[%s3589_s3 + $0x28] sm:$0xff] }
   0x6   :  { %2896 = vmatpush3.bf16.msra.mxu1 %v2893_v6  ;;  %2898 = vmatprep.subr.bf16.mxu0 %v2897_v10 }
   0x7   :  { %2901 = vmatprep.subr.bf16.mxu1 %v3161_v16 }
   0x8   :  { %2598 = vmatmul.mubr.msk.f32.vlgmr.msra.gmra.mrb[0].mxu0 %vm43_vm0, %v33_v12 }
   0x9   :  { %15 = vsyncpa [#allocation3], 0  ;;  %2605 = vmatmul.mubr.msk.f32.vlgmr.msra.gmra.mrb[0].mxu1 %vm43_vm0, %v33_v12  ;;  %2900 = vmatpush3.bf16.msra.mxu0 %v2897_v10  ;;  %v3264_v19 = vpack.c.bf16 %v2404_v15, %v2403_v14  ;;  %v3268_v20 = vpack.c.bf16 %v300_v18, %v299_v17  ;;  %v2405_v21 = vld [vmem:[%s3589_s3 + $0x30] sm:$0xff]  ;;  %v2406_v22 = vld [vmem:[%s3589_s3 + $0x38] sm:$0xff]  ;;  %vm3162_vm1 = vmmov 0   ;;  %v3163_v25 = vmov 0.0  }
   0xa   :  { %2903 = vmatpush3.bf16.msra.mxu1 %v3247_v13  ;;  %2611 = vmatprep.mubr.msk.f32.mxu0 %vm43_vm0, %v32_v5  ;;  %v2407_v23 = vld [vmem:[%s3589_s3 + $0x40] sm:$0xff]  ;;  %v2408_v24 = vld [vmem:[%s3589_s3 + $0x48] sm:$0xff]  ;;  %v3288_v26 = vpack.c.bf16 %v2406_v22, %v2405_v21  ;;  %vm313_vm2 = vcmask 261120   ;;  %v2409_v29 = vld [vmem:[%s3589_s3 + $0x50] sm:$0xff]  ;;  %vm2266_vm3 = vcmask 1041408   ;;  %vm2268_vm4 = vcmask 1043456  }
   0xb   :  { %2904 = vmatprep.subr.bf16.mxu1 %v3161_v16  ;;  %2907 = vmatprep.subr.bf16.mxu0 %v3161_v16  ;;  %v3296_v27 = vld [vmem:[%s3587_s1] sm:$0x3]  ;;  %v3299_v28 = vpack.c.bf16 %v2408_v24, %v2407_v23  ;;  %v2410_v30 = vld [vmem:[%s3589_s3 + $0x58] sm:$0xff]  ;;  %v2400_v40 = vld [vmem:[%s3590_s4 + $0x2] ss:$0 sm:$0xff]  ;;  %vm2270_vm5 = vcmask 1045504  }
   0xc   :  { %2612 = vmatmul.mubr.msk.f32.vlgmr.msra.gmra.mrb[2].mxu0 %vm43_vm0, %v33_v12  ;;  %2622 = vmatprep.mubr.msk.f32.mxu1 %vm3162_vm1, %v3163_v25  ;;  %v3312_v31 = vpack.c.bf16 %v2410_v30, %v2409_v29  ;;  %v2388_v32 = vld [vmem:[%s3590_s4] ss:$0 sm:$0xff]  ;;  %v2394_v33 = vld [vmem:[%s3590_s4 + $0x1] ss:$0 sm:$0xff]  ;;  %vm2264_vm6 = vcmask 261126  }
   0xd   :  { %2909 = vmatpush3.bf16.msra.mxu0 %v3264_v19  ;;  %2633 = vmatprep.mubr.msk.f32.mxu0 %vm3162_vm1, %v3163_v25  ;;  %v3360_v59 = vld [vmem:[%s3591_s5] ss:$0 sm:$0xff] }
   0xe   :  { %2906 = vmatpush3.bf16.msra.mxu1 %v3268_v20  ;;  %2910 = vmatprep.subr.bf16.mxu0 %v3161_v16 }
   0xf   :  { %2913 = vmatprep.subr.bf16.mxu1 %v3161_v16 }
  0x11   :  { %2623 = vmatmul.mubr.msk.f32.vlgmr.msra.gmra.mrb[2].mxu1 %vm313_vm2, %v3296_v27  ;;  %2912 = vmatpush3.bf16.msra.mxu0 %v3288_v26 }
  0x12   :  { %2915 = vmatpush3.bf16.msra.mxu1 %v3299_v28  ;;  %2644 = vmatprep.mubr.msk.f32.mxu1 %vm3162_vm1, %v3163_v25 }
  0x13   :  { %2916 = vmatprep.subr.bf16.mxu1 %v3161_v16  ;;  %2919 = vmatprep.subr.bf16.mxu0 %v3161_v16 }
  0x14   :  { %2634 = vmatmul.mubr.msk.f32.vlgmr.msra.gmra.mrb[4].mxu0 %vm313_vm2, %v3296_v27 }
  0x15   :  { %2921 = vmatpush3.bf16.msra.mxu0 %v3247_v13  ;;  %2655 = vmatprep.mubr.msk.f32.mxu0 %vm3162_vm1, %v3163_v25 }
  0x16   :  { %2918 = vmatpush3.bf16.msra.mxu1 %v3312_v31  ;;  %2922 = vmatprep.subr.bf16.mxu0 %v3161_v16 }
  0x17   :  { %2925 = vmatprep.subr.bf16.mxu1 %v3161_v16 }
  0x19   :  { %2645 = vmatmul.mubr.msk.f32.vlgmr.msra.gmra.mrb[4].mxu1 %vm313_vm2, %v3296_v27  ;;  %2924 = vmatpush3.bf16.msra.mxu0 %v3268_v20 }
  0x1a   :  { %2927 = vmatpush3.bf16.msra.mxu1 %v3264_v19  ;;  %2666 = vmatprep.mubr.msk.f32.mxu1 %vm3162_vm1, %v3163_v25 }
  0x1b   :  { %2928 = vmatprep.subr.bf16.mxu1 %v3161_v16  ;;  %2931 = vmatprep.subr.bf16.mxu0 %v3161_v16 }
  0x1e   :  { %2930 = vmatpush3.bf16.msra.mxu1 %v3288_v26 }
  0x1f   :  { %2937 = vmatprep.subr.bf16.mxu1 %v3161_v16 }
  0xdb   :  { %v2599_v34 = vpop.f32.mrb[0].mxu0 }
  0xdc   :  { %v2606_v35 = vpop.f32.mrb[0].mxu1  ;;  %v3342_v36 = vadd.f32 %v2599_v34, %v2388_v32  ;;  %v116_v37 = vpop.f32.mrb[1].mxu0 }
  0xdd   :  { %v3344_v38 = vadd.f32 %v2606_v35, %v2394_v33  ;;  %v202_v39 = vpop.f32.mrb[1].mxu1  ;;  %v3351_v44 = vadd.f32 %v2388_v32, %v116_v37 }
  0xde   :  { %v3354_v48 = vadd.f32 %v2394_v33, %v202_v39 }
  0xdf   :  { %v2613_v41 = vpop.f32.mrb[2].mxu0 }
  0xe0   :  { %v3349_v42 = vadd.f32 %v2613_v41, %v2400_v40  ;;  %v288_v43 = vpop.f32.mrb[3].mxu0 }
  0xe1   :  { %v3363_v63 = vadd.f32 %v2400_v40, %v288_v43 }
  0xe4   :  { %v383_v45 = vpop.f32.mrb[2].mxu1 }
  0xe5   :  { %v533_v46 = vadd.f32 %v383_v45, %v3351_v44  ;;  %v2624_v47 = vpop.f32.mrb[3].mxu1 }
  0xe7   :  { %v2415_v49 = vmul.f32 -1.442695, %v533_v46  ;;  %v453_v50 = vpop.f32.mrb[4].mxu0 }
  0xe8   :  { %v540_v51 = vadd.f32 %v453_v50, %v3354_v48  ;;  %v2635_v52 = vpop.f32.mrb[5].mxu0 }
  0xe9   :  { %3057 = vpow2.f32 %v2415_v49 }
  0xea   :  { %v2416_v53 = vmul.f32 -1.442695, %v540_v51 }
  0xec   :  { %v529_v54 = vpop.f32.mrb[4].mxu1  ;;  %3059 = vpow2.f32 %v2416_v53 }
  0xed   :  { %v2646_v55 = vpop.f32.mrb[5].mxu1  ;;  %v530_v61 = vadd.f32 %v3360_v59, %v529_v54 }
  0xf3   :  { %v3058_v56 = vpop.eup %3057 }
  0xf4   :  { %v537_v57 = vadd.f32 1.0, %v3058_v56 }
  0xf6   :  { %3061 = vrcp.f32 %v537_v57  ;;  %v3060_v58 = vpop.eup %3059 }
  0xf7   :  { %v544_v60 = vadd.f32 1.0, %v3060_v58 }
  0xf9   :  { %3063 = vrcp.f32 %v544_v60 }
 0x100   :  { %v3062_v62 = vpop.eup %3061 }
 0x101   :  { %v547_v0 = vmul.f32 %v3062_v62, %v530_v61 }
 0x103   :  { %v548_v1 = vadd.f32 %v547_v0, %v3363_v63  ;;  %v3064_v2 = vpop.eup %3063 }
 0x104   :  { %v550_v3 = vsub.f32 1.0, %v3064_v2  ;;  %v552_v6 = vmul.f32 %v3064_v2, %v3296_v27 }
 0x105   :  { %3065 = vtanh.f32 %v548_v1 }
 0x10f   :  { %v3066_v4 = vpop.eup %3065 }
 0x110   :  { %v551_v5 = vmul.f32 %v3066_v4, %v550_v3 }
 0x112   :  { %v3367_v7 = vadd.f32 %v552_v6, %v551_v5 }
 0x114   :  { %2656 = vmatmul.mubr.msk.f32.vlgmr.msra.gmra.mrb[6].mxu0 %vm313_vm2, %v3367_v7  ;;  %2667 = vmatmul.mubr.msk.f32.vlgmr.msra.gmra.mrb[6].mxu1 %vm313_vm2, %v3367_v7  ;;  %v795_v41 = vrot.slane %v3367_v7, 6 }
 0x115   :  { %2933 = vmatpush3.bf16.msra.mxu0 %v3299_v28  ;;  %2677 = vmatprep.mubr.msk.f32.mxu0 %vm3162_vm1, %v3163_v25 }
 0x116   :  { %2934 = vmatprep.subr.bf16.mxu0 %v3161_v16  ;;  %2939 = vmatpush3.bf16.msra.mxu1 %v3247_v13 }
 0x117   :  { %2940 = vmatprep.subr.bf16.mxu1 %v3161_v16  ;;  %2688 = vmatprep.mubr.msk.f32.mxu1 %vm3162_vm1, %v3163_v25 }
 0x119   :  { %2936 = vmatpush3.bf16.msra.mxu0 %v3312_v31 }
 0x11a   :  { %2943 = vmatprep.subr.bf16.mxu0 %v3161_v16  ;;  %2942 = vmatpush3.bf16.msra.mxu1 %v3268_v20 }
 0x11b   :  { %2949 = vmatprep.subr.bf16.mxu1 %v3161_v16 }
 0x11c   :  { %2678 = vmatmul.mubr.msk.f32.vlgmr.msra.gmra.mrb[8].mxu0 %vm313_vm2, %v3367_v7 }
 0x11d   :  { %2945 = vmatpush3.bf16.msra.mxu0 %v3264_v19  ;;  %2699 = vmatprep.mubr.msk.f32.mxu0 %vm3162_vm1, %v3163_v25 }
 0x11e   :  { %2946 = vmatprep.subr.bf16.mxu0 %v3161_v16 }
 0x121   :  { %2948 = vmatpush3.bf16.msra.mxu0 %v3288_v26 }
 0x122   :  { %2955 = vmatprep.subr.bf16.mxu0 %v3161_v16 }
 0x1e7   :  { %v623_v8 = vpop.f32.mrb[6].mxu0  ;;  %v693_v9 = vpop.f32.mrb[6].mxu1 }
 0x1e8   :  { %v768_v10 = vrot.slane %v623_v8, 6  ;;  %v2657_v11 = vpop.f32.mrb[7].mxu0  ;;  %v2668_v12 = vpop.f32.mrb[7].mxu1  ;;  %v778_v14 = vrot.slane %v693_v9, 6 }
 0x1ea   :  { %v770_v15 = vadd.f32 %v768_v10, %v3351_v44  ;;  %v780_v18 = vadd.f32 %v778_v14, %v3354_v48 }
 0x1ec   :  { %v2420_v17 = vmul.f32 -1.442695, %v770_v15  ;;  %v2421_v23 = vmul.f32 -1.442695, %v780_v18 }
 0x1ee   :  { %3067 = vpow2.f32 %v2420_v17 }
 0x1ef   :  { %v763_v21 = vpop.f32.mrb[8].mxu0  ;;  %3069 = vpow2.f32 %v2421_v23 }
 0x1f0   :  { %v2679_v22 = vpop.f32.mrb[9].mxu0  ;;  %v764_v30 = vadd.f32 %v3360_v59, %v763_v21 }
 0x1f2   :  { %v788_v33 = vrot.slane %v764_v30, 6 }
 0x1f8   :  { %v3068_v24 = vpop.eup %3067 }
 0x1f9   :  { %v774_v27 = vadd.f32 1.0, %v3068_v24  ;;  %v3070_v29 = vpop.eup %3069 }
 0x1fa   :  { %v784_v32 = vadd.f32 1.0, %v3070_v29 }
 0x1fb   :  { %3071 = vrcp.f32 %v774_v27 }
 0x1fc   :  { %3073 = vrcp.f32 %v784_v32 }
 0x205   :  { %v3072_v34 = vpop.eup %3071 }
 0x206   :  { %v790_v35 = vmul.f32 %v3072_v34, %v788_v33  ;;  %v3074_v39 = vpop.eup %3073 }
 0x207   :  { %v793_v40 = vsub.f32 1.0, %v3074_v39  ;;  %v797_v45 = vmul.f32 %v3074_v39, %v795_v41 }
 0x208   :  { %v791_v37 = vadd.f32 %v790_v35, %v3363_v63 }
 0x20a   :  { %3075 = vtanh.f32 %v791_v37 }
 0x214   :  { %v3076_v43 = vpop.eup %3075 }
 0x215   :  { %v794_v46 = vmul.f32 %v3076_v43, %v793_v40 }
 0x217   :  { %v798_v47 = vadd.f32 %v797_v45, %v794_v46 }
 0x219   :  { %v800_v49 = vrot.slane %v798_v47, 2  ;;  %v1041_v8 = vrot.slane %v798_v47, 6  ;;  %v2267_v21 = vsel %vm2266_vm3, %v3367_v7, %v798_v47 }
 0x21b   :  { %2689 = vmatmul.mubr.msk.f32.vlgmr.msra.gmra.mrb[8].mxu1 %vm313_vm2, %v800_v49  ;;  %2700 = vmatmul.mubr.msk.f32.vlgmr.msra.gmra.mrb[10].mxu0 %vm313_vm2, %v800_v49 }
 0x21c   :  { %2951 = vmatpush3.bf16.msra.mxu1 %v3299_v28  ;;  %2710 = vmatprep.mubr.msk.f32.mxu1 %vm3162_vm1, %v3163_v25 }
 0x21d   :  { %2952 = vmatprep.subr.bf16.mxu1 %v3161_v16  ;;  %2957 = vmatpush3.bf16.msra.mxu0 %v3247_v13 }
 0x21e   :  { %2958 = vmatprep.subr.bf16.mxu0 %v3161_v16  ;;  %2721 = vmatprep.mubr.msk.f32.mxu0 %vm3162_vm1, %v3163_v25 }
 0x220   :  { %2954 = vmatpush3.bf16.msra.mxu1 %v3312_v31 }
 0x221   :  { %2961 = vmatprep.subr.bf16.mxu1 %v3161_v16  ;;  %2960 = vmatpush3.bf16.msra.mxu0 %v3268_v20 }
 0x222   :  { %2967 = vmatprep.subr.bf16.mxu0 %v3161_v16 }
 0x223   :  { %2711 = vmatmul.mubr.msk.f32.vlgmr.msra.gmra.mrb[10].mxu1 %vm313_vm2, %v800_v49 }
 0x224   :  { %2963 = vmatpush3.bf16.msra.mxu1 %v3264_v19  ;;  %2732 = vmatprep.mubr.msk.f32.mxu1 %vm3162_vm1, %v3163_v25 }
 0x225   :  { %2964 = vmatprep.subr.bf16.mxu1 %v3161_v16 }
 0x228   :  { %2966 = vmatpush3.bf16.msra.mxu1 %v3288_v26 }
 0x229   :  { %2973 = vmatprep.subr.bf16.mxu1 %v3161_v16 }
 0x2ee   :  { %v869_v50 = vpop.f32.mrb[8].mxu1  ;;  %v939_v51 = vpop.f32.mrb[10].mxu0 }
 0x2ef   :  { %v1014_v52 = vrot.slane %v869_v50, 4  ;;  %v1024_v53 = vrot.slane %v939_v51, 4  ;;  %v2690_v54 = vpop.f32.mrb[9].mxu1  ;;  %v2701_v55 = vpop.f32.mrb[11].mxu0 }
 0x2f1   :  { %v1016_v56 = vadd.f32 %v1014_v52, %v3351_v44  ;;  %v1026_v57 = vadd.f32 %v1024_v53, %v3354_v48 }
 0x2f3   :  { %v2425_v58 = vmul.f32 -1.442695, %v1016_v56  ;;  %v2426_v60 = vmul.f32 -1.442695, %v1026_v57 }
 0x2f5   :  { %3077 = vpow2.f32 %v2425_v58 }
 0x2f6   :  { %3079 = vpow2.f32 %v2426_v60  ;;  %v1009_v61 = vpop.f32.mrb[10].mxu1 }
 0x2f7   :  { %v2712_v62 = vpop.f32.mrb[11].mxu1  ;;  %v1010_v4 = vadd.f32 %v3360_v59, %v1009_v61 }
 0x2f9   :  { %v1034_v5 = vrot.slane %v1010_v4, 4 }
 0x2ff   :  { %v3078_v0 = vpop.eup %3077 }
 0x300   :  { %v3080_v1 = vpop.eup %3079  ;;  %v1020_v2 = vadd.f32 1.0, %v3078_v0 }
 0x301   :  { %v1030_v3 = vadd.f32 1.0, %v3080_v1 }
 0x302   :  { %3081 = vrcp.f32 %v1020_v2 }
 0x303   :  { %3083 = vrcp.f32 %v1030_v3 }
 0x30c   :  { %v3082_v6 = vpop.eup %3081 }
 0x30d   :  { %v3084_v9 = vpop.eup %3083  ;;  %v1036_v10 = vmul.f32 %v3082_v6, %v1034_v5 }
 0x30e   :  { %v1043_v11 = vmul.f32 %v3084_v9, %v1041_v8  ;;  %v1039_v14 = vsub.f32 1.0, %v3084_v9 }
 0x30f   :  { %v1037_v12 = vadd.f32 %v1036_v10, %v3363_v63 }
 0x311   :  { %3085 = vtanh.f32 %v1037_v12 }
 0x31b   :  { %v3086_v15 = vpop.eup %3085 }
 0x31c   :  { %v1040_v17 = vmul.f32 %v3086_v15, %v1039_v14 }
 0x31e   :  { %v1044_v18 = vadd.f32 %v1043_v11, %v1040_v17 }
 0x320   :  { %v1046_v22 = vrot.slane %v1044_v18, 4  ;;  %v2269_v23 = vsel %vm2268_vm4, %v2267_v21, %v1044_v18  ;;  %v1287_v51 = vrot.slane %v1044_v18, 6 }
 0x322   :  { %2722 = vmatmul.mubr.msk.f32.vlgmr.msra.gmra.mrb[12].mxu0 %vm313_vm2, %v1046_v22  ;;  %2733 = vmatmul.mubr.msk.f32.vlgmr.msra.gmra.mrb[12].mxu1 %vm313_vm2, %v1046_v22 }
 0x323   :  { %2969 = vmatpush3.bf16.msra.mxu0 %v3299_v28  ;;  %2743 = vmatprep.mubr.msk.f32.mxu0 %vm3162_vm1, %v3163_v25 }
 0x324   :  { %2970 = vmatprep.subr.bf16.mxu0 %v3161_v16  ;;  %2975 = vmatpush3.bf16.msra.mxu1 %v3247_v13 }
 0x325   :  { %2976 = vmatprep.subr.bf16.mxu1 %v3161_v16  ;;  %2754 = vmatprep.mubr.msk.f32.mxu1 %vm3162_vm1, %v3163_v25 }
 0x327   :  { %2972 = vmatpush3.bf16.msra.mxu0 %v3312_v31 }
 0x328   :  { %2979 = vmatprep.subr.bf16.mxu0 %v3161_v16  ;;  %2978 = vmatpush3.bf16.msra.mxu1 %v3268_v20 }
 0x329   :  { %2985 = vmatprep.subr.bf16.mxu1 %v3161_v16 }
 0x32a   :  { %2744 = vmatmul.mubr.msk.f32.vlgmr.msra.gmra.mrb[14].mxu0 %vm313_vm2, %v1046_v22 }
 0x32b   :  { %2981 = vmatpush3.bf16.msra.mxu0 %v3264_v19  ;;  %2765 = vmatprep.mubr.msk.f32.mxu0 %vm3162_vm1, %v3163_v25 }
 0x32c   :  { %2982 = vmatprep.subr.bf16.mxu0 %v3161_v16 }
 0x32f   :  { %2984 = vmatpush3.bf16.msra.mxu0 %v3288_v26 }
 0x330   :  { %2991 = vmatprep.subr.bf16.mxu0 %v3161_v16 }
 0x3f5   :  { %v1115_v7 = vpop.f32.mrb[12].mxu0  ;;  %v1185_v24 = vpop.f32.mrb[12].mxu1 }
 0x3f6   :  { %v1260_v27 = vrot.slane %v1115_v7, 2  ;;  %v1270_v29 = vrot.slane %v1185_v24, 2  ;;  %v2723_v30 = vpop.f32.mrb[13].mxu0  ;;  %v2734_v32 = vpop.f32.mrb[13].mxu1 }
 0x3f8   :  { %v1262_v33 = vadd.f32 %v1260_v27, %v3351_v44  ;;  %v1272_v34 = vadd.f32 %v1270_v29, %v3354_v48 }
 0x3fa   :  { %v2430_v35 = vmul.f32 -1.442695, %v1262_v33  ;;  %v2431_v37 = vmul.f32 -1.442695, %v1272_v34 }
 0x3fc   :  { %3087 = vpow2.f32 %v2430_v35 }
 0x3fd   :  { %3089 = vpow2.f32 %v2431_v37  ;;  %v1255_v39 = vpop.f32.mrb[14].mxu0 }
 0x3fe   :  { %v2745_v40 = vpop.f32.mrb[15].mxu0  ;;  %v1256_v47 = vadd.f32 %v3360_v59, %v1255_v39 }
 0x400   :  { %v1280_v49 = vrot.slane %v1256_v47, 2 }
 0x406   :  { %v3088_v41 = vpop.eup %3087 }
 0x407   :  { %v3090_v43 = vpop.eup %3089  ;;  %v1266_v45 = vadd.f32 1.0, %v3088_v41 }
 0x408   :  { %v1276_v46 = vadd.f32 1.0, %v3090_v43 }
 0x409   :  { %3091 = vrcp.f32 %v1266_v45 }
 0x40a   :  { %3093 = vrcp.f32 %v1276_v46 }
 0x413   :  { %v3092_v50 = vpop.eup %3091 }
 0x414   :  { %v3094_v44 = vpop.eup %3093  ;;  %v1282_v52 = vmul.f32 %v3092_v50, %v1280_v49 }
 0x415   :  { %v1289_v48 = vmul.f32 %v3094_v44, %v1287_v51  ;;  %v1285_v54 = vsub.f32 1.0, %v3094_v44 }
 0x416   :  { %v1283_v53 = vadd.f32 %v1282_v52, %v3363_v63 }
 0x418   :  { %3095 = vtanh.f32 %v1283_v53 }
 0x422   :  { %v3096_v55 = vpop.eup %3095 }
 0x423   :  { %v1286_v56 = vmul.f32 %v3096_v55, %v1285_v54 }
 0x425   :  { %v1290_v57 = vadd.f32 %v1289_v48, %v1286_v56 }
 0x427   :  { %v1292_v58 = vrot.slane %v1290_v57, 6  ;;  %v3452_v60 = vsel %vm2270_vm5, %v2269_v23, %v1290_v57 }
 0x429   :  { %2755 = vmatmul.mubr.msk.f32.vlgmr.msra.gmra.mrb[14].mxu1 %vm313_vm2, %v1292_v58  ;;  %2766 = vmatmul.mubr.msk.f32.vlgmr.msra.gmra.mrb[16].mxu0 %vm313_vm2, %v1292_v58 }
 0x42a   :  { %2987 = vmatpush3.bf16.msra.mxu1 %v3299_v28  ;;  %2776 = vmatprep.mubr.msk.f32.mxu1 %vm3162_vm1, %v3163_v25 }
 0x42b   :  { %2988 = vmatprep.subr.bf16.mxu1 %v3161_v16  ;;  %2993 = vmatpush3.bf16.msra.mxu0 %v3247_v13 }
 0x42c   :  { %2994 = vmatprep.subr.bf16.mxu0 %v3161_v16  ;;  %2787 = vmatprep.mubr.msk.f32.mxu0 %vm3162_vm1, %v3163_v25 }
 0x42e   :  { %2990 = vmatpush3.bf16.msra.mxu1 %v3312_v31 }
 0x42f   :  { %2997 = vmatprep.subr.bf16.mxu1 %v3161_v16  ;;  %2996 = vmatpush3.bf16.msra.mxu0 %v3268_v20 }
 0x430   :  { %3003 = vmatprep.subr.bf16.mxu0 %v3161_v16 }
 0x431   :  { %2777 = vmatmul.mubr.msk.f32.vlgmr.msra.gmra.mrb[16].mxu1 %vm313_vm2, %v1292_v58 }
 0x432   :  { %2999 = vmatpush3.bf16.msra.mxu1 %v3264_v19  ;;  %2798 = vmatprep.mubr.msk.f32.mxu1 %vm3162_vm1, %v3163_v25 }
 0x433   :  { %3000 = vmatprep.subr.bf16.mxu1 %v3161_v16 }
 0x436   :  { %3002 = vmatpush3.bf16.msra.mxu1 %v3288_v26 }
 0x437   :  { %3009 = vmatprep.subr.bf16.mxu1 %v3161_v16 }
 0x4fc   :  { %v1361_v63 = vpop.f32.mrb[14].mxu1  ;;  %v1431_v61 = vpop.f32.mrb[16].mxu0 }
 0x4fd   :  { %v1505_v62 = vadd.f32 %v1361_v63, %v3342_v36  ;;  %v2756_v0 = vpop.f32.mrb[15].mxu1  ;;  %v2767_v1 = vpop.f32.mrb[17].mxu0  ;;  %v1512_v3 = vadd.f32 %v1431_v61, %v3344_v38 }
 0x4ff   :  { %v2435_v2 = vmul.f32 -1.442695, %v1505_v62  ;;  %v2436_v4 = vmul.f32 -1.442695, %v1512_v3 }
 0x501   :  { %3097 = vpow2.f32 %v2435_v2 }
 0x502   :  { %3099 = vpow2.f32 %v2436_v4 }
 0x504   :  { %v1501_v5 = vpop.f32.mrb[16].mxu1 }
 0x505   :  { %v2778_v6 = vpop.f32.mrb[17].mxu1  ;;  %v1502_v12 = vadd.f32 %v3360_v59, %v1501_v5 }
 0x50b   :  { %v3098_v8 = vpop.eup %3097 }
 0x50c   :  { %v1509_v9 = vadd.f32 1.0, %v3098_v8  ;;  %v3100_v10 = vpop.eup %3099 }
 0x50d   :  { %v1516_v11 = vadd.f32 1.0, %v3100_v10 }
 0x50e   :  { %3101 = vrcp.f32 %v1509_v9 }
 0x50f   :  { %3103 = vrcp.f32 %v1516_v11 }
 0x518   :  { %v3102_v14 = vpop.eup %3101 }
 0x519   :  { %v1519_v15 = vmul.f32 %v3102_v14, %v1502_v12  ;;  %v3104_v18 = vpop.eup %3103 }
 0x51a   :  { %v1522_v21 = vsub.f32 1.0, %v3104_v18  ;;  %v1525_v7 = vmul.f32 %v3104_v18, %v1292_v58 }
 0x51b   :  { %v1520_v17 = vadd.f32 %v1519_v15, %v3349_v42 }
 0x51d   :  { %3105 = vtanh.f32 %v1520_v17 }
 0x527   :  { %v3106_v22 = vpop.eup %3105 }
 0x528   :  { %v1523_v23 = vmul.f32 %v3106_v22, %v1522_v21 }
 0x52a   :  { %v3479_v24 = vadd.f32 %v1525_v7, %v1523_v23 }
 0x52c   :  { %2788 = vmatmul.mubr.msk.f32.vlgmr.msra.gmra.mrb[18].mxu0 %vm313_vm2, %v3479_v24  ;;  %2799 = vmatmul.mubr.msk.f32.vlgmr.msra.gmra.mrb[18].mxu1 %vm313_vm2, %v3479_v24  ;;  %v1768_v55 = vrot.slane %v3479_v24, 6 }
 0x52d   :  { %3005 = vmatpush3.bf16.msra.mxu0 %v3299_v28  ;;  %2809 = vmatprep.mubr.msk.f32.mxu0 %vm3162_vm1, %v3163_v25 }
 0x52e   :  { %3006 = vmatprep.subr.bf16.mxu0 %v3161_v16  ;;  %3011 = vmatpush3.bf16.msra.mxu1 %v3247_v13 }
 0x52f   :  { %3012 = vmatprep.subr.bf16.mxu1 %v3161_v16  ;;  %2820 = vmatprep.mubr.msk.f32.mxu1 %vm3162_vm1, %v3163_v25 }
 0x531   :  { %3008 = vmatpush3.bf16.msra.mxu0 %v3312_v31 }
 0x532   :  { %3015 = vmatprep.subr.bf16.mxu0 %v3161_v16  ;;  %3014 = vmatpush3.bf16.msra.mxu1 %v3268_v20 }
 0x533   :  { %3021 = vmatprep.subr.bf16.mxu1 %v3161_v16 }
 0x534   :  { %2810 = vmatmul.mubr.msk.f32.vlgmr.msra.gmra.mrb[20].mxu0 %vm313_vm2, %v3479_v24 }
 0x535   :  { %3017 = vmatpush3.bf16.msra.mxu0 %v3264_v19  ;;  %2831 = vmatprep.mubr.msk.f32.mxu0 %vm3162_vm1, %v3163_v25 }
 0x536   :  { %3018 = vmatprep.subr.bf16.mxu0 %v3161_v16 }
 0x539   :  { %3020 = vmatpush3.bf16.msra.mxu0 %v3288_v26 }
 0x53a   :  { %3027 = vmatprep.subr.bf16.mxu0 %v3161_v16 }
 0x5ff   :  { %v1596_v27 = vpop.f32.mrb[18].mxu0  ;;  %v1666_v29 = vpop.f32.mrb[18].mxu1 }
 0x600   :  { %v1741_v30 = vrot.slane %v1596_v27, 6  ;;  %v2789_v32 = vpop.f32.mrb[19].mxu0  ;;  %v2800_v33 = vpop.f32.mrb[19].mxu1  ;;  %v1751_v34 = vrot.slane %v1666_v29, 6 }
 0x602   :  { %v1743_v35 = vadd.f32 %v1741_v30, %v3342_v36  ;;  %v1753_v39 = vadd.f32 %v1751_v34, %v3344_v38 }
 0x604   :  { %v2440_v37 = vmul.f32 -1.442695, %v1743_v35  ;;  %v2441_v43 = vmul.f32 -1.442695, %v1753_v39 }
 0x606   :  { %3107 = vpow2.f32 %v2440_v37 }
 0x607   :  { %v1736_v40 = vpop.f32.mrb[20].mxu0  ;;  %3109 = vpow2.f32 %v2441_v43 }
 0x608   :  { %v2811_v41 = vpop.f32.mrb[21].mxu0  ;;  %v1737_v49 = vadd.f32 %v3360_v59, %v1736_v40 }
 0x60a   :  { %v1761_v51 = vrot.slane %v1737_v49, 6 }
 0x610   :  { %v3108_v45 = vpop.eup %3107 }
 0x611   :  { %v1747_v46 = vadd.f32 1.0, %v3108_v45  ;;  %v3110_v47 = vpop.eup %3109 }
 0x612   :  { %v1757_v50 = vadd.f32 1.0, %v3110_v47 }
 0x613   :  { %3111 = vrcp.f32 %v1747_v46 }
 0x614   :  { %3113 = vrcp.f32 %v1757_v50 }
 0x61d   :  { %v3112_v44 = vpop.eup %3111 }
 0x61e   :  { %v1763_v52 = vmul.f32 %v3112_v44, %v1761_v51  ;;  %v3114_v53 = vpop.eup %3113 }
 0x61f   :  { %v1766_v54 = vsub.f32 1.0, %v3114_v53  ;;  %v1770_v57 = vmul.f32 %v3114_v53, %v1768_v55 }
 0x620   :  { %v1764_v48 = vadd.f32 %v1763_v52, %v3349_v42 }
 0x622   :  { %3115 = vtanh.f32 %v1764_v48 }
 0x62c   :  { %v3116_v56 = vpop.eup %3115 }
 0x62d   :  { %v1767_v58 = vmul.f32 %v3116_v56, %v1766_v54 }
 0x62f   :  { %v1771_v63 = vadd.f32 %v1770_v57, %v1767_v58 }
 0x631   :  { %v1773_v61 = vrot.slane %v1771_v63, 2  ;;  %v2014_v17 = vrot.slane %v1771_v63, 6  ;;  %v2272_v32 = vsel %vm2266_vm3, %v3479_v24, %v1771_v63  ;;  %v2275_v24 = vld [vmem:[%s3592_s6] sm:$0xff] }
 0x633   :  { %2821 = vmatmul.mubr.msk.f32.vlgmr.msra.gmra.mrb[20].mxu1 %vm313_vm2, %v1773_v61  ;;  %2832 = vmatmul.mubr.msk.f32.vlgmr.msra.gmra.mrb[22].mxu0 %vm313_vm2, %v1773_v61 }
 0x634   :  { %3023 = vmatpush3.bf16.msra.mxu1 %v3299_v28  ;;  %2842 = vmatprep.mubr.msk.f32.mxu1 %vm3162_vm1, %v3163_v25 }
 0x635   :  { %3024 = vmatprep.subr.bf16.mxu1 %v3161_v16  ;;  %3029 = vmatpush3.bf16.msra.mxu0 %v3247_v13 }
 0x636   :  { %3030 = vmatprep.subr.bf16.mxu0 %v3161_v16  ;;  %2853 = vmatprep.mubr.msk.f32.mxu0 %vm3162_vm1, %v3163_v25 }
 0x638   :  { %3026 = vmatpush3.bf16.msra.mxu1 %v3312_v31 }
 0x639   :  { %3033 = vmatprep.subr.bf16.mxu1 %v3161_v16  ;;  %3032 = vmatpush3.bf16.msra.mxu0 %v3268_v20 }
 0x63a   :  { %3039 = vmatprep.subr.bf16.mxu0 %v3161_v16 }
 0x63b   :  { %2843 = vmatmul.mubr.msk.f32.vlgmr.msra.gmra.mrb[22].mxu1 %vm313_vm2, %v1773_v61 }
 0x63c   :  { %3035 = vmatpush3.bf16.msra.mxu1 %v3264_v19  ;;  %2864 = vmatprep.mubr.msk.f32.mxu1 %vm3162_vm1, %v3163_v25 }
 0x63d   :  { %3036 = vmatprep.subr.bf16.mxu1 %v3161_v16 }
 0x640   :  { %3038 = vmatpush3.bf16.msra.mxu1 %v3288_v26 }
 0x706   :  { %v1842_v13 = vpop.f32.mrb[20].mxu1  ;;  %v1912_v62 = vpop.f32.mrb[22].mxu0 }
 0x707   :  { %v1987_v0 = vrot.slane %v1842_v13, 4  ;;  %v1997_v1 = vrot.slane %v1912_v62, 4  ;;  %v2822_v2 = vpop.f32.mrb[21].mxu1  ;;  %v2833_v3 = vpop.f32.mrb[23].mxu0 }
 0x709   :  { %v1989_v20 = vadd.f32 %v1987_v0, %v3342_v36  ;;  %v1999_v4 = vadd.f32 %v1997_v1, %v3344_v38 }
 0x70b   :  { %v2445_v5 = vmul.f32 -1.442695, %v1989_v20  ;;  %v2446_v6 = vmul.f32 -1.442695, %v1999_v4 }
 0x70d   :  { %3117 = vpow2.f32 %v2445_v5 }
 0x70e   :  { %3119 = vpow2.f32 %v2446_v6  ;;  %v1982_v19 = vpop.f32.mrb[22].mxu1 }
 0x70f   :  { %v2844_v8 = vpop.f32.mrb[23].mxu1  ;;  %v1983_v12 = vadd.f32 %v3360_v59, %v1982_v19 }
 0x711   :  { %v2007_v14 = vrot.slane %v1983_v12, 4 }
 0x717   :  { %v3118_v9 = vpop.eup %3117 }
 0x718   :  { %v3120_v10 = vpop.eup %3119  ;;  %v1993_v11 = vadd.f32 1.0, %v3118_v9 }
 0x719   :  { %v2003_v26 = vadd.f32 1.0, %v3120_v10 }
 0x71a   :  { %3121 = vrcp.f32 %v1993_v11 }
 0x71b   :  { %3123 = vrcp.f32 %v2003_v26 }
 0x724   :  { %v3122_v15 = vpop.eup %3121 }
 0x725   :  { %v3124_v18 = vpop.eup %3123  ;;  %v2009_v21 = vmul.f32 %v3122_v15, %v2007_v14 }
 0x726   :  { %v2016_v22 = vmul.f32 %v3124_v18, %v2014_v17  ;;  %v2012_v7 = vsub.f32 1.0, %v3124_v18 }
 0x727   :  { %v2010_v23 = vadd.f32 %v2009_v21, %v3349_v42 }
 0x729   :  { %3125 = vtanh.f32 %v2010_v23 }
 0x733   :  { %v3126_v27 = vpop.eup %3125 }
 0x734   :  { %v2013_v29 = vmul.f32 %v3126_v27, %v2012_v7 }
 0x736   :  { %v2017_v30 = vadd.f32 %v2016_v22, %v2013_v29 }
 0x738   :  { %v2019_v33 = vrot.slane %v2017_v30, 4  ;;  %v2273_v34 = vsel %vm2268_vm4, %v2272_v32, %v2017_v30  ;;  %v2260_v57 = vrot.slane %v2017_v30, 6 }
 0x73a   :  { %2854 = vmatmul.mubr.msk.f32.vlgmr.msra.gmra.mrb[24].mxu0 %vm313_vm2, %v2019_v33  ;;  %2865 = vmatmul.mubr.msk.f32.vlgmr.msra.gmra.mrb[24].mxu1 %vm313_vm2, %v2019_v33 }
 0x73b   :  { %3041 = vmatpush3.bf16.msra.mxu0 %v3299_v28  ;;  %2886 = vmatprep.mubr.msk.f32.mxu1 %vm313_vm2, %v3452_v60  ;;  %v2276_v28 = vld [vmem:[%s3592_s6 + $0x8] sm:$0xff]  ;;  %v2277_v60 = vld [vmem:[%s3592_s6 + $0x10] sm:$0xff] }
 0x73c   :  { %3042 = vmatprep.subr.bf16.mxu0 %v3161_v16  ;;  %2875 = vmatprep.mubr.msk.f32.mxu0 %vm3162_vm1, %v3163_v25  ;;  %v3045_v16 = vpack.c.bf16 %v2276_v28, %v2275_v24  ;;  %v2278_v25 = vld [vmem:[%s3592_s6 + $0x18] sm:$0xff]  ;;  %s3164_s6 = smov [#allocation2]  }
 0x73d   :  { %s2378_s17 = sshll.u32 %s3164_s6, 4  ;;  %s2379_s17 = int_to_ptr.vmem [resolvable:$true] %s2378_s17 }
 0x73e   :  { %3046 = vmatprep.subr.bf16.mxu1 %v3045_v16  ;;  %s3137_s18 = scalar_lea.vmem %s2379_s17, 32  ;;  %p3142_p1 = scmp.lt.s32.totalorder %s2379_s17, %s2379_s17 }
 0x73f   :  { %3044 = vmatpush3.bf16.msra.mxu0 %v3312_v31  ;;  %v3049_v31 = vpack.c.bf16 %v2278_v25, %v2277_v60  ;;  %3048 = vmatpush3.bf16.msra.mxu1 %v3045_v16  ;;  %p3138_p0 = scmp.ne.s32.totalorder %s2379_s17, %s3137_s18  ;;  %p3143_p2 = scmp.lt.s32.totalorder %s3137_s18, %s3137_s18 }
 0x741   :  { %3050 = vmatprep.subr.bf16.mxu1 %v3049_v31  ;;  %p3144_p3 = por %p3143_p2, %p3142_p1 }
 0x742   :  { %2876 = vmatmul.mubr.msk.f32.vlgmr.msra.gmra.mrb[26].mxu0 %vm313_vm2, %v2019_v33 }
 0x743   :  { %3052 = vmatpush3.bf16.msra.mxu1 %v3049_v31  ;;  %p3145_p4 = pnand %p3144_p3, %p3138_p0 }
 0x80d   :  { %v2088_v35 = vpop.f32.mrb[24].mxu0  ;;  %v2158_v37 = vpop.f32.mrb[24].mxu1 }
 0x80e   :  { %v2233_v39 = vrot.slane %v2088_v35, 2  ;;  %v2243_v40 = vrot.slane %v2158_v37, 2  ;;  %v2855_v41 = vpop.f32.mrb[25].mxu0  ;;  %v2866_v43 = vpop.f32.mrb[25].mxu1 }
 0x810   :  { %v2235_v45 = vadd.f32 %v2233_v39, %v3342_v36  ;;  %v2245_v46 = vadd.f32 %v2243_v40, %v3344_v38 }
 0x812   :  { %v2450_v47 = vmul.f32 -1.442695, %v2235_v45  ;;  %v2451_v49 = vmul.f32 -1.442695, %v2245_v46 }
 0x814   :  { %3127 = vpow2.f32 %v2450_v47 }
 0x815   :  { %3129 = vpow2.f32 %v2451_v49  ;;  %v2228_v50 = vpop.f32.mrb[26].mxu0 }
 0x816   :  { %v2877_v51 = vpop.f32.mrb[27].mxu0  ;;  %v2229_v54 = vadd.f32 %v3360_v59, %v2228_v50 }
 0x818   :  { %v2253_v55 = vrot.slane %v2229_v54, 2 }
 0x81e   :  { %v3128_v44 = vpop.eup %3127 }
 0x81f   :  { %v3130_v52 = vpop.eup %3129  ;;  %v2239_v48 = vadd.f32 1.0, %v3128_v44 }
 0x820   :  { %v2249_v53 = vadd.f32 1.0, %v3130_v52 }
 0x821   :  { %3131 = vrcp.f32 %v2239_v48 }
 0x822   :  { %3133 = vrcp.f32 %v2249_v53 }
 0x82b   :  { %v3132_v56 = vpop.eup %3131 }
 0x82c   :  { %v3134_v36 = vpop.eup %3133  ;;  %v2255_v58 = vmul.f32 %v3132_v56, %v2253_v55 }
 0x82d   :  { %v2262_v38 = vmul.f32 %v3134_v36, %v2260_v57  ;;  %v2258_v61 = vsub.f32 1.0, %v3134_v36 }
 0x82e   :  { %v2256_v63 = vadd.f32 %v2255_v58, %v3349_v42 }
 0x830   :  { %3135 = vtanh.f32 %v2256_v63 }
 0x83a   :  { %v3136_v13 = vpop.eup %3135 }
 0x83b   :  { %v2259_v62 = vmul.f32 %v3136_v13, %v2258_v61 }
 0x83d   :  { %v2263_v0 = vadd.f32 %v2262_v38, %v2259_v62 }
 0x83f   :  { %v2274_v1 = vsel %vm2270_vm5, %v2273_v34, %v2263_v0  ;;  %2265 = vst.msk [vmem:[#allocation2 - $0x6] sm:$0xc0] %vm2264_vm6, %v2263_v0 }
 0x840   :  { %2887 = vmatmul.mubr.msk.f32.vlgmr.msra.gmra.mrb[26].mxu1 %vm313_vm2, %v2274_v1 }
 0x841   :  { %3148 = shalt.err (!%p3145_p4)
}
 0x842   :  { %s3149_s21 = scalar_lea.hbm %s3595_s9, 32 }
 0x843   :  { %p3150_p5 = scmp.ne.s32.totalorder %s3595_s9, %s3149_s21  ;;  %p3153_p6 = scmp.lt.u32.totalorder %s3149_s21, %s3595_s9 }
 0x845   :  { %p3155_p7 = pnand %p3153_p6, %p3150_p5 }
 0x847   :  { %3158 = shalt.err (!%p3155_p7)
}
 0x848   :  { %2381 = dma.vmem_to_hbm [thread:$0]  %s2379_s17, 32, %s3595_s9, [#allocation3]   ;;  %v2452_v42 = vld [vmem:[%s3593_s7] ss:$0 sm:$0xff]  ;;  %vm2367_vm7 = vcmask 64512  }
 0x913   :  { %v2888_v59 = vpop.f32.mrb[26].mxu1 }
 0x914   :  { %v2364_v2 = vadd.f32 %v2888_v59, %v2452_v42  ;;  %v2358_v3 = vpop.f32.mrb[27].mxu1 }
 0x915   :  { %v2359_v20 = vadd.f32 %v2452_v42, %v2358_v3 }
 0x916   :  { %2369 = vst.msk [vmem:[%s3594_s8 + $0x8] sm:$0xff] %vm2367_vm7, %v2364_v2 }
 0x917   :  { %2368 = vst.msk [vmem:[%s3594_s8] sm:$0xff] %vm2367_vm7, %v2359_v20 }
 0x918   :  { %3159 = dma.done.wait [#allocation3], 32  }
 0x919   :  { %3160 = vsyncadd [#allocation3], 4294967264 }
 0x91a   :  { %2387 = vsyncpa [#allocation3], 1 }

</bundles_post_ra>
